<compile_context>
chip_gen: v7x
topology: tpu7x:2x2x1
jax: 0.10.0
libtpu: 0.0.40
codegen_flags: <defaults>
</compile_context>

<pallas_src>
import jax
import jax.numpy as jnp
import numpy as np
from jax import lax
from jax.experimental import pallas as pl
from jax.experimental.pallas import tpu as pltpu

HIDDEN = 128        # word_embedding_dim for a 'tiny' BERT checkpoint
DOWN = 64           # args.bert_adapter_down_size
BATCH, SEQ = 2, 8
LN_EPS = 1e-12      # BERT LayerNorm eps
ROW_TILE = 256      # target rows per grid step (clamped to M for small inputs)


def _adapted_self_output_kernel(h_ref, res_ref,
                                wdense_ref, bdense_ref,
                                wdown_ref, bdown_ref,
                                wup_ref, bup_ref,
                                gamma_ref, beta_ref,
                                o_ref):
    """One (TM, D) row tile: dense -> adapter -> +input_tensor -> LayerNorm."""
    h = h_ref[...]                                                      # (TM, D)

    # self_output.dense
    d = jnp.dot(h, wdense_ref[...], preferred_element_type=jnp.float32) + bdense_ref[...]
    # self_output.dropout / adapter dropout: identity at inference.
    # TODO(synk): training-time dropout has no eval-path kernel equivalent; omitted.

    # AdapterBlock: down-projection -> GELU -> up-projection -> adapter residual
    a = jnp.dot(d, wdown_ref[...], preferred_element_type=jnp.float32) + bdown_ref[...]
    a = jax.nn.gelu(a, approximate=True)
    ad = jnp.dot(a, wup_ref[...], preferred_element_type=jnp.float32) + bup_ref[...] + d

    # residual with the attention input, then LayerNorm over the lane (last) axis
    y = ad + res_ref[...]
    mu = jnp.mean(y, axis=-1, keepdims=True)
    yc = y - mu
    var = jnp.mean(yc * yc, axis=-1, keepdims=True)
    inv = lax.rsqrt(var + LN_EPS)
    o_ref[...] = (yc * inv) * gamma_ref[...] + beta_ref[...]


def bert_adapted_self_output(hidden_states, input_tensor, params, *, row_tile=ROW_TILE):
    """hidden_states / input_tensor: (B, S, D) -> (B, S, D)."""
    B, S, D = hidden_states.shape
    M = B * S
    h = hidden_states.reshape(M, D).astype(jnp.float32)
    r = input_tensor.reshape(M, D).astype(jnp.float32)

    tm = min(row_tile, M)
    assert M % tm == 0 and (tm == M or tm % 8 == 0), "row tile must divide M and be 8-aligned"
    dn = params["w_down"].shape[1]

    def rows(i):          # activation tiles march down the row axis
        return (i, 0)

    def resident(i):      # weights / biases / LN params stay on block (0, 0)
        return (0, 0)

    out = pl.pallas_call(
        _adapted_self_output_kernel,
        out_shape=jax.ShapeDtypeStruct((M, D), jnp.float32),
        grid_spec=pltpu.PrefetchScalarGridSpec(
            num_scalar_prefetch=0,
            grid=(M // tm,),
            in_specs=[
                pl.BlockSpec((tm, D), rows),        # hidden_states tile
                pl.BlockSpec((tm, D), rows),        # input_tensor (residual) tile
                pl.BlockSpec((D, D), resident),     # dense weight
                pl.BlockSpec((1, D), resident),     # dense bias
                pl.BlockSpec((D, dn), resident),    # adapter down weight
                pl.BlockSpec((1, dn), resident),    # adapter down bias
                pl.BlockSpec((dn, D), resident),    # adapter up weight
                pl.BlockSpec((1, D), resident),     # adapter up bias
                pl.BlockSpec((1, D), resident),     # LayerNorm gamma
                pl.BlockSpec((1, D), resident),     # LayerNorm beta
            ],
            out_specs=pl.BlockSpec((tm, D), rows),
        ),
        compiler_params=pltpu.CompilerParams(
            dimension_semantics=("parallel",)),     # shard row tiles across TCs (v7x)
    )(h, r,
      params["w_dense"], params["b_dense"],
      params["w_down"], params["b_down"],
      params["w_up"], params["b_up"],
      params["ln_gamma"], params["ln_beta"])
    return out.reshape(B, S, D)


def init_params(key, hidden=HIDDEN, down=DOWN):
    def xavier(k, shape):
        fan_in, fan_out = shape
        std = (2.0 / (fan_in + fan_out)) ** 0.5
        return jax.random.normal(k, shape, jnp.float32) * std

    k1, k2, k3 = jax.random.split(key, 3)
    return {
        "w_dense": xavier(k1, (hidden, hidden)),
        "b_dense": jnp.zeros((1, hidden), jnp.float32),
        "w_down": xavier(k2, (hidden, down)),
        "b_down": jnp.zeros((1, down), jnp.float32),
        "w_up": xavier(k3, (down, hidden)),
        "b_up": jnp.zeros((1, hidden), jnp.float32),
        "ln_gamma": jnp.ones((1, hidden), jnp.float32),
        "ln_beta": jnp.zeros((1, hidden), jnp.float32),
    }


def _reference_forward(hidden_states, input_tensor, params):
    h = hidden_states.astype(jnp.float32)
    d = h @ params["w_dense"] + params["b_dense"]
    a = jax.nn.gelu(d @ params["w_down"] + params["b_down"], approximate=True)
    ad = a @ params["w_up"] + params["b_up"] + d
    y = ad + input_tensor.astype(jnp.float32)
    mu = jnp.mean(y, axis=-1, keepdims=True)
    var = jnp.mean((y - mu) ** 2, axis=-1, keepdims=True)
    return (y - mu) / jnp.sqrt(var + LN_EPS) * params["ln_gamma"] + params["ln_beta"]


if __name__ == "__main__":
    key = jax.random.PRNGKey(0)
    k_params, k_h, k_x = jax.random.split(key, 3)
    params = init_params(k_params)

    hidden_states = jax.random.normal(k_h, (BATCH, SEQ, HIDDEN), jnp.float32)
    input_tensor = jax.random.normal(k_x, (BATCH, SEQ, HIDDEN), jnp.float32)

    out = bert_adapted_self_output(hidden_states, input_tensor, params)
    out = jax.block_until_ready(out)

    ref = _reference_forward(hidden_states, input_tensor, params)
    np.testing.assert_allclose(np.asarray(out), np.asarray(ref), rtol=1e-4, atol=1e-4)

    assert out.shape == (BATCH, SEQ, HIDDEN)
    print("KERNEL_OK")
</pallas_src>

<mosaic_0001>
module attributes {stable_mosaic.version = 11 : i64} {
  func.func @_adapted_self_output_kernel(%arg0: i32, %arg1: memref<16x128xf32, #tpu.memory_space<vmem>>, %arg2: memref<16x128xf32, #tpu.memory_space<vmem>>, %arg3: memref<128x128xf32, #tpu.memory_space<vmem>>, %arg4: memref<1x128xf32, #tpu.memory_space<vmem>>, %arg5: memref<128x64xf32, #tpu.memory_space<vmem>>, %arg6: memref<1x64xf32, #tpu.memory_space<vmem>>, %arg7: memref<64x128xf32, #tpu.memory_space<vmem>>, %arg8: memref<1x128xf32, #tpu.memory_space<vmem>>, %arg9: memref<1x128xf32, #tpu.memory_space<vmem>>, %arg10: memref<1x128xf32, #tpu.memory_space<vmem>>, %arg11: memref<16x128xf32, #tpu.memory_space<vmem>>) attributes {dimension_semantics = [#tpu.dimension_semantics<parallel>], iteration_bounds = array<i64: 1>, scalar_prefetch = 0 : i64, scratch_operands = 0 : i64, tpu.core_type = #tpu.core_type<tc>, window_params = [{transform_indices = @transform_0, window_bounds = array<i64: 16, 128>}, {transform_indices = @transform_1, window_bounds = array<i64: 16, 128>}, {pipeline_mode = #tpu.pipeline_mode<synchronous>, transform_indices = @transform_2, window_bounds = array<i64: 128, 128>}, {pipeline_mode = #tpu.pipeline_mode<synchronous>, transform_indices = @transform_3, window_bounds = array<i64: 1, 128>}, {pipeline_mode = #tpu.pipeline_mode<synchronous>, transform_indices = @transform_4, window_bounds = array<i64: 128, 64>}, {pipeline_mode = #tpu.pipeline_mode<synchronous>, transform_indices = @transform_5, window_bounds = array<i64: 1, 64>}, {pipeline_mode = #tpu.pipeline_mode<synchronous>, transform_indices = @transform_6, window_bounds = array<i64: 64, 128>}, {pipeline_mode = #tpu.pipeline_mode<synchronous>, transform_indices = @transform_7, window_bounds = array<i64: 1, 128>}, {pipeline_mode = #tpu.pipeline_mode<synchronous>, transform_indices = @transform_8, window_bounds = array<i64: 1, 128>}, {pipeline_mode = #tpu.pipeline_mode<synchronous>, transform_indices = @transform_9, window_bounds = array<i64: 1, 128>}, {transform_indices = @transform_10, window_bounds = array<i64: 16, 128>}]} {
    %c0 = arith.constant 0 : index
    %c0_0 = arith.constant 0 : index
    %0 = vector.load %arg1[%c0, %c0_0] : memref<16x128xf32, #tpu.memory_space<vmem>>, vector<16x128xf32>
    %c0_1 = arith.constant 0 : index
    %c0_2 = arith.constant 0 : index
    %1 = vector.load %arg3[%c0_1, %c0_2] : memref<128x128xf32, #tpu.memory_space<vmem>>, vector<128x128xf32>
    %cst = arith.constant dense<0.000000e+00> : vector<16x128xf32>
    %2 = tpu.matmul %0, %1, %cst {dimension_numbers = #tpu.dot_dimension_numbers<[1], [0], [0], [1], [0, 0, 1, 1], [], []>} : vector<16x128xf32>, vector<128x128xf32>, vector<16x128xf32> -> vector<16x128xf32>
    %c0_3 = arith.constant 0 : index
    %c0_4 = arith.constant 0 : index
    %3 = vector.load %arg4[%c0_3, %c0_4] : memref<1x128xf32, #tpu.memory_space<vmem>>, vector<1x128xf32>
    %4 = vector.broadcast %3 : vector<1x128xf32> to vector<16x128xf32>
    %5 = arith.addf %2, %4 : vector<16x128xf32>
    %c0_5 = arith.constant 0 : index
    %c0_6 = arith.constant 0 : index
    %6 = vector.load %arg5[%c0_5, %c0_6] : memref<128x64xf32, #tpu.memory_space<vmem>>, vector<128x64xf32>
    %cst_7 = arith.constant dense<0.000000e+00> : vector<16x64xf32>
    %7 = tpu.matmul %5, %6, %cst_7 {dimension_numbers = #tpu.dot_dimension_numbers<[1], [0], [0], [1], [0, 0, 1, 1], [], []>} : vector<16x128xf32>, vector<128x64xf32>, vector<16x64xf32> -> vector<16x64xf32>
    %c0_8 = arith.constant 0 : index
    %c0_9 = arith.constant 0 : index
    %8 = vector.load %arg6[%c0_8, %c0_9] : memref<1x64xf32, #tpu.memory_space<vmem>>, vector<1x64xf32>
    %9 = vector.broadcast %8 : vector<1x64xf32> to vector<16x64xf32>
    %10 = arith.addf %7, %9 : vector<16x64xf32>
    %11 = arith.mulf %10, %10 : vector<16x64xf32>
    %12 = arith.mulf %10, %11 : vector<16x64xf32>
    %cst_10 = arith.constant 4.471500e-02 : f32
    %13 = vector.broadcast %cst_10 : f32 to vector<16x64xf32>
    %14 = arith.mulf %13, %12 : vector<16x64xf32>
    %15 = arith.addf %10, %14 : vector<16x64xf32>
    %cst_11 = arith.constant 0.797884583 : f32
    %16 = vector.broadcast %cst_11 : f32 to vector<16x64xf32>
    %17 = arith.mulf %16, %15 : vector<16x64xf32>
    %18 = math.tanh %17 : vector<16x64xf32>
    %cst_12 = arith.constant 1.000000e+00 : f32
    %19 = vector.broadcast %cst_12 : f32 to vector<16x64xf32>
    %20 = arith.addf %19, %18 : vector<16x64xf32>
    %cst_13 = arith.constant 5.000000e-01 : f32
    %21 = vector.broadcast %cst_13 : f32 to vector<16x64xf32>
    %22 = arith.mulf %21, %20 : vector<16x64xf32>
    %23 = arith.mulf %10, %22 : vector<16x64xf32>
    %c0_14 = arith.constant 0 : index
    %c0_15 = arith.constant 0 : index
    %24 = vector.load %arg7[%c0_14, %c0_15] : memref<64x128xf32, #tpu.memory_space<vmem>>, vector<64x128xf32>
    %cst_16 = arith.constant dense<0.000000e+00> : vector<16x128xf32>
    %25 = tpu.matmul %23, %24, %cst_16 {dimension_numbers = #tpu.dot_dimension_numbers<[1], [0], [0], [1], [0, 0, 1, 1], [], []>} : vector<16x64xf32>, vector<64x128xf32>, vector<16x128xf32> -> vector<16x128xf32>
    %c0_17 = arith.constant 0 : index
    %c0_18 = arith.constant 0 : index
    %26 = vector.load %arg8[%c0_17, %c0_18] : memref<1x128xf32, #tpu.memory_space<vmem>>, vector<1x128xf32>
    %27 = vector.broadcast %26 : vector<1x128xf32> to vector<16x128xf32>
    %28 = arith.addf %25, %27 : vector<16x128xf32>
    %29 = arith.addf %28, %5 : vector<16x128xf32>
    %c0_19 = arith.constant 0 : index
    %c0_20 = arith.constant 0 : index
    %30 = vector.load %arg2[%c0_19, %c0_20] : memref<16x128xf32, #tpu.memory_space<vmem>>, vector<16x128xf32>
    %31 = arith.addf %29, %30 : vector<16x128xf32>
    %cst_21 = arith.constant dense<0.000000e+00> : vector<16xf32>
    %32 = vector.multi_reduction <add>, %31, %cst_21 [1] : vector<16x128xf32> to vector<16xf32>
    %33 = vector.shape_cast %32 : vector<16xf32> to vector<16x1xf32>
    %cst_22 = arith.constant 1.280000e+02 : f32
    %34 = vector.broadcast %cst_22 : f32 to vector<16x1xf32>
    %35 = arith.divf %33, %34 : vector<16x1xf32>
    %36 = vector.broadcast %35 : vector<16x1xf32> to vector<16x128xf32>
    %37 = arith.subf %31, %36 : vector<16x128xf32>
    %38 = arith.mulf %37, %37 : vector<16x128xf32>
    %cst_23 = arith.constant dense<0.000000e+00> : vector<16xf32>
    %39 = vector.multi_reduction <add>, %38, %cst_23 [1] : vector<16x128xf32> to vector<16xf32>
    %40 = vector.shape_cast %39 : vector<16xf32> to vector<16x1xf32>
    %cst_24 = arith.constant 1.280000e+02 : f32
    %41 = vector.broadcast %cst_24 : f32 to vector<16x1xf32>
    %42 = arith.divf %40, %41 : vector<16x1xf32>
    %cst_25 = arith.constant 9.99999996E-13 : f32
    %43 = vector.broadcast %cst_25 : f32 to vector<16x1xf32>
    %44 = arith.addf %42, %43 : vector<16x1xf32>
    %45 = math.rsqrt %44 : vector<16x1xf32>
    %46 = vector.broadcast %45 : vector<16x1xf32> to vector<16x128xf32>
    %47 = arith.mulf %37, %46 : vector<16x128xf32>
    %c0_26 = arith.constant 0 : index
    %c0_27 = arith.constant 0 : index
    %48 = vector.load %arg9[%c0_26, %c0_27] : memref<1x128xf32, #tpu.memory_space<vmem>>, vector<1x128xf32>
    %49 = vector.broadcast %48 : vector<1x128xf32> to vector<16x128xf32>
    %50 = arith.mulf %47, %49 : vector<16x128xf32>
    %c0_28 = arith.constant 0 : index
    %c0_29 = arith.constant 0 : index
    %51 = vector.load %arg10[%c0_28, %c0_29] : memref<1x128xf32, #tpu.memory_space<vmem>>, vector<1x128xf32>
    %52 = vector.broadcast %51 : vector<1x128xf32> to vector<16x128xf32>
    %53 = arith.addf %50, %52 : vector<16x128xf32>
    %c0_30 = arith.constant 0 : index
    %c0_31 = arith.constant 0 : index
    %54 = vector.load %arg11[%c0_30, %c0_31] : memref<16x128xf32, #tpu.memory_space<vmem>>, vector<16x128xf32>
    tpu.vector_store %arg11[%c0_30, %c0_31], %53 {strides = array<i32>} : memref<16x128xf32, #tpu.memory_space<vmem>>, vector<16x128xf32>,
    return
  }
  func.func @transform_0(%arg0: i32) -> (i32, i32) {
    %c0_i32 = arith.constant 0 : i32
    %c0_i32_0 = arith.constant 0 : i32
    return %arg0, %c0_i32 : i32, i32
  }
  func.func @transform_1(%arg0: i32) -> (i32, i32) {
    %c0_i32 = arith.constant 0 : i32
    %c0_i32_0 = arith.constant 0 : i32
    return %arg0, %c0_i32 : i32, i32
  }
  func.func @transform_2(%arg0: i32) -> (i32, i32) {
    %c0_i32 = arith.constant 0 : i32
    %c0_i32_0 = arith.constant 0 : i32
    %c0_i32_1 = arith.constant 0 : i32
    return %c0_i32, %c0_i32_0 : i32, i32
  }
  func.func @transform_3(%arg0: i32) -> (i32, i32) {
    %c0_i32 = arith.constant 0 : i32
    %c0_i32_0 = arith.constant 0 : i32
    %c0_i32_1 = arith.constant 0 : i32
    return %c0_i32, %c0_i32_0 : i32, i32
  }
  func.func @transform_4(%arg0: i32) -> (i32, i32) {
    %c0_i32 = arith.constant 0 : i32
    %c0_i32_0 = arith.constant 0 : i32
    %c0_i32_1 = arith.constant 0 : i32
    return %c0_i32, %c0_i32_0 : i32, i32
  }
  func.func @transform_5(%arg0: i32) -> (i32, i32) {
    %c0_i32 = arith.constant 0 : i32
    %c0_i32_0 = arith.constant 0 : i32
    %c0_i32_1 = arith.constant 0 : i32
    return %c0_i32, %c0_i32_0 : i32, i32
  }
  func.func @transform_6(%arg0: i32) -> (i32, i32) {
    %c0_i32 = arith.constant 0 : i32
    %c0_i32_0 = arith.constant 0 : i32
    %c0_i32_1 = arith.constant 0 : i32
    return %c0_i32, %c0_i32_0 : i32, i32
  }
  func.func @transform_7(%arg0: i32) -> (i32, i32) {
    %c0_i32 = arith.constant 0 : i32
    %c0_i32_0 = arith.constant 0 : i32
    %c0_i32_1 = arith.constant 0 : i32
    return %c0_i32, %c0_i32_0 : i32, i32
  }
  func.func @transform_8(%arg0: i32) -> (i32, i32) {
    %c0_i32 = arith.constant 0 : i32
    %c0_i32_0 = arith.constant 0 : i32
    %c0_i32_1 = arith.constant 0 : i32
    return %c0_i32, %c0_i32_0 : i32, i32
  }
  func.func @transform_9(%arg0: i32) -> (i32, i32) {
    %c0_i32 = arith.constant 0 : i32
    %c0_i32_0 = arith.constant 0 : i32
    %c0_i32_1 = arith.constant 0 : i32
    return %c0_i32, %c0_i32_0 : i32, i32
  }
  func.func @transform_10(%arg0: i32) -> (i32, i32) {
    %c0_i32 = arith.constant 0 : i32
    %c0_i32_0 = arith.constant 0 : i32
    return %arg0, %c0_i32 : i32, i32
  }
}

</mosaic_0001>

<bundles_post_ra>
// kernel: tpu_custom_call.1
= control target key start
LH: loop header
LB: loop body
LE: loop exit
PB: predicated region body
PF: predicated region fallthrough
CT: control target
= control target key end

     0   :  { %15 = vsyncpa [#allocation3], 0  ;;  %s991_s0 = inlined_call_operand.hbm [shape: f32[16,128], index: 0, kind: input, shape index: {}]   ;;  %s992_s1 = inlined_call_operand.hbm [shape: f32[16,128], index: 1, kind: input, shape index: {}]   ;;  %s993_s2 = inlined_call_operand.vmem [shape: f32[128,128], index: 2, kind: input, shape index: {}]   ;;  %s994_s3 = inlined_call_operand.vmem [shape: f32[1,128], index: 3, kind: input, shape index: {}]   ;;  %s995_s4 = inlined_call_operand.vmem [shape: f32[128,64], index: 4, kind: input, shape index: {}]   ;;  %s996_s5 = inlined_call_operand.vmem [shape: f32[1,64], index: 5, kind: input, shape index: {}]   ;;  %s997_s6 = inlined_call_operand.vmem [shape: f32[64,128], index: 6, kind: input, shape index: {}]   ;;  %s998_s7 = inlined_call_operand.vmem [shape: f32[1,128], index: 7, kind: input, shape index: {}]   ;;  %s999_s8 = inlined_call_operand.vmem [shape: f32[1,128], index: 8, kind: input, shape index: {}]   ;;  %s1000_s9 = inlined_call_operand.vmem [shape: f32[1,128], index: 9, kind: input, shape index: {}]   ;;  %s1001_s10 = inlined_call_operand.hbm [shape: f32[16,128], index: 10, kind: output, shape index: {}]  }
   0x1   :  { %16 = vsyncpa [#allocation6], 0 }
   0x2   :  { %17 = vsyncpa [#allocation4], 0  ;;  %s751_s13 = smov [#allocation2]   ;;  %s679_s17 = scalar_lea.hbm %s991_s0, 256 }
   0x3   :  { %s23_s14 = sshll.u32 %s751_s13, 4  ;;  %p680_p0 = scmp.ne.s32.totalorder %s991_s0, %s679_s17  ;;  %s24_s14 = int_to_ptr.vmem [resolvable:$true] %s23_s14 }
   0x4   :  { %p683_p1 = scmp.lt.u32.totalorder %s679_s17, %s991_s0 }
   0x6   :  { %p685_p2 = pnand %p683_p1, %p680_p0 }
   0x8   :  { %688 = shalt.err (!%p685_p2)
}
   0x9   :  { %s689_s22 = scalar_lea.vmem %s24_s14, 256  ;;  %p694_p4 = scmp.lt.s32.totalorder %s24_s14, %s24_s14 }
   0xa   :  { %p690_p3 = scmp.ne.s32.totalorder %s24_s14, %s689_s22  ;;  %p695_p5 = scmp.lt.s32.totalorder %s689_s22, %s689_s22 }
   0xc   :  { %p696_p6 = por %p695_p5, %p694_p4 }
   0xe   :  { %p697_p7 = pnand %p696_p6, %p690_p3 }
  0x10   :  { %700 = shalt.err (!%p697_p7)
}
  0x11   :  { %s752_s23 = smov 128   ;;  %s753_s24 = smov 8  }
  0x12   :  { %29 = dma.hbm_to_vmem [thread:$0]  %s991_s0, 256, %s24_s14, [#allocation3], %s752_s23, %s752_s23, %s753_s24  }
  0x13   :  { %s754_s27 = smov [#allocation5]   ;;  %s701_s11 = scalar_lea.hbm %s992_s1, 256 }
  0x14   :  { %s35_s28 = sshll.u32 %s754_s27, 4  ;;  %p702_p8 = scmp.ne.s32.totalorder %s992_s1, %s701_s11  ;;  %s36_s28 = int_to_ptr.vmem [resolvable:$true] %s35_s28 }
  0x15   :  { %p705_p9 = scmp.lt.u32.totalorder %s701_s11, %s992_s1 }
  0x17   :  { %p707_p10 = pnand %p705_p9, %p702_p8 }
  0x19   :  { %710 = shalt.err (!%p707_p10)
}
  0x1a   :  { %s711_s17 = scalar_lea.vmem %s36_s28, 256  ;;  %p716_p12 = scmp.lt.s32.totalorder %s36_s28, %s36_s28 }
  0x1b   :  { %p712_p11 = scmp.ne.s32.totalorder %s36_s28, %s711_s17  ;;  %p717_p13 = scmp.lt.s32.totalorder %s711_s17, %s711_s17 }
  0x1d   :  { %p718_p0 = por %p717_p13, %p716_p12 }
  0x1f   :  { %p719_p1 = pnand %p718_p0, %p712_p11 }
  0x21   :  { %722 = shalt.err (!%p719_p1)
}
  0x22   :  { %41 = dma.hbm_to_vmem [thread:$0]  %s992_s1, 256, %s36_s28, [#allocation6], %s752_s23, %s752_s23, %s753_s24  }
  0x23   :  { %745 = dma.done.wait [#allocation3], 256  }
  0x24   :  { %746 = vsyncadd [#allocation3], 4294967040 }
  0x25   :  { %747 = dma.done.wait [#allocation6], 256  }
  0x26   :  { %748 = vsyncadd [#allocation6], 4294967040  ;;  %v66_v0 = vld [vmem:[%s993_s2] sm:$0xff]  ;;  %v67_v1 = vld [vmem:[%s993_s2 + $0x8] sm:$0xff]  ;;  %vm295_vm0 = vcmask 523264   ;;  %s755_s21 = smov [#allocation7]  }
  0x27   :  { %v68_v2 = vld [vmem:[%s993_s2 + $0x10] sm:$0xff]  ;;  %v586_v3 = vpack.c.bf16 %v67_v1, %v66_v0  ;;  %v69_v4 = vld [vmem:[%s993_s2 + $0x18] sm:$0xff]  ;;  %v70_v6 = vld [vmem:[%s993_s2 + $0x20] sm:$0xff]  ;;  %s431_s22 = sshll.u32 %s755_s21, 4  ;;  %s432_s22 = int_to_ptr.vmem [resolvable:$true] %s431_s22 }
  0x28   :  { %v590_v5 = vpack.c.bf16 %v69_v4, %v68_v2  ;;  %v71_v7 = vld [vmem:[%s993_s2 + $0x28] sm:$0xff]  ;;  %v72_v9 = vld [vmem:[%s993_s2 + $0x30] sm:$0xff]  ;;  %v73_v10 = vld [vmem:[%s993_s2 + $0x38] sm:$0xff]  ;;  %s723_s25 = scalar_lea.vmem %s432_s22, 256  ;;  %p728_p3 = scmp.lt.s32.totalorder %s432_s22, %s432_s22 }
  0x29   :  { %587 = vmatprep.subr.bf16.mxu0 %v586_v3  ;;  %v594_v8 = vpack.c.bf16 %v71_v7, %v70_v6  ;;  %v64_v11 = vld [vmem:[#allocation2] sm:$0xff]  ;;  %v165_v13 = vld [vmem:[%s995_s4 + $0x8] sm:$0xff]  ;;  %v166_v14 = vld [vmem:[%s995_s4 + $0x10] sm:$0xff]  ;;  %v598_v20 = vpack.c.bf16 %v73_v10, %v72_v9  ;;  %p724_p2 = scmp.ne.s32.totalorder %s432_s22, %s723_s25  ;;  %p729_p4 = scmp.lt.s32.totalorder %s723_s25, %s723_s25 }
  0x2a   :  { %589 = vmatpush3.bf16.msra.mxu0 %v586_v3  ;;  %529 = vmatprep.mubr.f32.mxu0 %v64_v11  ;;  %v164_v12 = vld [vmem:[%s995_s4] sm:$0xff]  ;;  %v167_v16 = vld [vmem:[%s995_s4 + $0x18] sm:$0xff]  ;;  %v169_v19 = vld [vmem:[%s995_s4 + $0x28] sm:$0xff] }
  0x2b   :  { %591 = vmatprep.subr.bf16.mxu0 %v590_v5  ;;  %v618_v15 = vpack.c.bf16 %v165_v13, %v164_v12  ;;  %v622_v17 = vpack.c.bf16 %v167_v16, %v166_v14  ;;  %v168_v18 = vld [vmem:[%s995_s4 + $0x20] sm:$0xff]  ;;  %v75_v22 = vld [vmem:[%s993_s2 + $0x48] sm:$0xff]  ;;  %v170_v24 = vld [vmem:[%s995_s4 + $0x30] sm:$0xff]  ;;  %p730_p5 = por %p729_p4, %p728_p3 }
  0x2c   :  { %v74_v21 = vld [vmem:[%s993_s2 + $0x40] sm:$0xff]  ;;  %v626_v23 = vpack.c.bf16 %v169_v19, %v168_v18  ;;  %v171_v25 = vld [vmem:[%s995_s4 + $0x38] sm:$0xff]  ;;  %v76_v27 = vld [vmem:[%s993_s2 + $0x50] sm:$0xff] }
  0x2d   :  { %619 = vmatprep.subr.bf16.mxu1 %v618_v15  ;;  %v602_v26 = vpack.c.bf16 %v75_v22, %v74_v21  ;;  %v77_v28 = vld [vmem:[%s993_s2 + $0x58] sm:$0xff]  ;;  %v630_v29 = vpack.c.bf16 %v171_v25, %v170_v24  ;;  %v172_v30 = vld [vmem:[%s995_s4 + $0x40] sm:$0xff]  ;;  %v173_v31 = vld [vmem:[%s995_s4 + $0x48] sm:$0xff]  ;;  %p731_p6 = pnand %p730_p5, %p724_p2 }
  0x2e   :  { %593 = vmatpush3.bf16.msra.mxu0 %v590_v5  ;;  %621 = vmatpush3.bf16.msra.mxu1 %v618_v15  ;;  %v606_v32 = vpack.c.bf16 %v77_v28, %v76_v27  ;;  %v78_v33 = vld [vmem:[%s993_s2 + $0x60] sm:$0xff]  ;;  %v79_v34 = vld [vmem:[%s993_s2 + $0x68] sm:$0xff]  ;;  %v634_v35 = vpack.c.bf16 %v173_v31, %v172_v30  ;;  %v174_v36 = vld [vmem:[%s995_s4 + $0x50] sm:$0xff] }
  0x2f   :  { %595 = vmatprep.subr.bf16.mxu0 %v594_v8  ;;  %623 = vmatprep.subr.bf16.mxu1 %v622_v17  ;;  %v175_v37 = vld [vmem:[%s995_s4 + $0x58] sm:$0xff]  ;;  %v610_v38 = vpack.c.bf16 %v79_v34, %v78_v33  ;;  %v80_v39 = vld [vmem:[%s993_s2 + $0x70] sm:$0xff]  ;;  %v176_v42 = vld [vmem:[%s995_s4 + $0x60] sm:$0xff] }
  0x30   :  { %v81_v40 = vld [vmem:[%s993_s2 + $0x78] sm:$0xff]  ;;  %v638_v41 = vpack.c.bf16 %v175_v37, %v174_v36  ;;  %v177_v43 = vld [vmem:[%s995_s4 + $0x68] sm:$0xff]  ;;  %v178_v47 = vld [vmem:[%s995_s4 + $0x70] sm:$0xff] }
  0x31   :  { %v614_v44 = vpack.c.bf16 %v81_v40, %v80_v39  ;;  %v642_v45 = vpack.c.bf16 %v177_v43, %v176_v42  ;;  %v65_v46 = vld [vmem:[#allocation2 + $0x8] sm:$0xff]  ;;  %v179_v48 = vld [vmem:[%s995_s4 + $0x78] sm:$0xff]  ;;  %v444_v50 = vld [vmem:[%s994_s3] ss:$0 sm:$0xff] }
  0x32   :  { %597 = vmatpush3.bf16.msra.mxu0 %v594_v8  ;;  %625 = vmatpush3.bf16.msra.mxu1 %v622_v17  ;;  %v646_v49 = vpack.c.bf16 %v179_v48, %v178_v47  ;;  %v280_v55 = vld [vmem:[%s997_s6] sm:$0xff]  ;;  %v281_v56 = vld [vmem:[%s997_s6 + $0x8] sm:$0xff]  ;;  %v282_v58 = vld [vmem:[%s997_s6 + $0x10] sm:$0xff] }
  0x33   :  { %599 = vmatprep.subr.bf16.mxu0 %v598_v20  ;;  %627 = vmatprep.subr.bf16.mxu1 %v626_v23  ;;  %v650_v57 = vpack.c.bf16 %v281_v56, %v280_v55  ;;  %v283_v59 = vld [vmem:[%s997_s6 + $0x18] sm:$0xff]  ;;  %v284_v61 = vld [vmem:[%s997_s6 + $0x20] sm:$0xff]  ;;  %v285_v62 = vld [vmem:[%s997_s6 + $0x28] sm:$0xff] }
  0x34   :  { %v654_v60 = vpack.c.bf16 %v283_v59, %v282_v58  ;;  %v658_v63 = vpack.c.bf16 %v285_v62, %v284_v61  ;;  %v286_v0 = vld [vmem:[%s997_s6 + $0x30] sm:$0xff]  ;;  %v287_v1 = vld [vmem:[%s997_s6 + $0x38] sm:$0xff]  ;;  %v445_v3 = vld [vmem:[%s996_s5] ss:$0 sm:$0xff] }
  0x35   :  { %v662_v2 = vpack.c.bf16 %v287_v1, %v286_v0  ;;  %v379_v31 = vld [vmem:[#allocation5] sm:$0xff] }
  0x36   :  { %601 = vmatpush3.bf16.msra.mxu0 %v598_v20  ;;  %629 = vmatpush3.bf16.msra.mxu1 %v626_v23 }
  0x37   :  { %603 = vmatprep.subr.bf16.mxu0 %v602_v26  ;;  %631 = vmatprep.subr.bf16.mxu1 %v630_v29 }
  0x3a   :  { %605 = vmatpush3.bf16.msra.mxu0 %v602_v26  ;;  %633 = vmatpush3.bf16.msra.mxu1 %v630_v29  ;;  %v446_v26 = vld [vmem:[%s998_s7] ss:$0 sm:$0xff] }
  0x3b   :  { %607 = vmatprep.subr.bf16.mxu0 %v606_v32  ;;  %635 = vmatprep.subr.bf16.mxu1 %v634_v35 }
  0x3e   :  { %609 = vmatpush3.bf16.msra.mxu0 %v606_v32  ;;  %637 = vmatpush3.bf16.msra.mxu1 %v634_v35  ;;  %v380_v35 = vld [vmem:[#allocation5 + $0x8] sm:$0xff] }
  0x3f   :  { %611 = vmatprep.subr.bf16.mxu0 %v610_v38  ;;  %639 = vmatprep.subr.bf16.mxu1 %v638_v41 }
  0x42   :  { %613 = vmatpush3.bf16.msra.mxu0 %v610_v38  ;;  %641 = vmatpush3.bf16.msra.mxu1 %v638_v41 }
  0x43   :  { %615 = vmatprep.subr.bf16.mxu0 %v614_v44  ;;  %643 = vmatprep.subr.bf16.mxu1 %v642_v45 }
  0x46   :  { %617 = vmatpush3.bf16.msra.mxu0 %v614_v44  ;;  %645 = vmatpush3.bf16.msra.mxu1 %v642_v45 }
  0x47   :  { %647 = vmatprep.subr.bf16.mxu1 %v646_v49  ;;  %651 = vmatprep.subr.bf16.mxu0 %v650_v57 }
  0x49   :  { %530 = vmatmul.mubr.f32.vlgmr.msra.gmra.mrb[0].mxu0 %v65_v46 }
  0x4a   :  { %649 = vmatpush3.bf16.msra.mxu1 %v646_v49  ;;  %653 = vmatpush3.bf16.msra.mxu0 %v650_v57 }
  0x4b   :  { %655 = vmatprep.subr.bf16.mxu0 %v654_v60 }
  0x4e   :  { %657 = vmatpush3.bf16.msra.mxu0 %v654_v60 }
  0x4f   :  { %659 = vmatprep.subr.bf16.mxu0 %v658_v63 }
  0x52   :  { %661 = vmatpush3.bf16.msra.mxu0 %v658_v63 }
  0x53   :  { %663 = vmatprep.subr.bf16.mxu0 %v662_v2 }
  0x56   :  { %665 = vmatpush3.bf16.msra.mxu0 %v662_v2 }
 0x11c   :  { %v531_v51 = vpop.f32.mrb[0].mxu0 }
 0x11d   :  { %v155_v52 = vpop.f32.mrb[1].mxu0  ;;  %v161_v54 = vadd.f32 %v531_v51, %v444_v50 }
 0x11e   :  { %v156_v53 = vadd.f32 %v444_v50, %v155_v52  ;;  %v449_v52 = vld [vmem:[%s999_s8] ss:$0 sm:$0xff] }
 0x120   :  { %564 = vmatprep.mubr.f32.mxu1 %v156_v53 }
 0x121   :  { %565 = vmatmul.mubr.f32.vlgmr.msra.gmra.mrb[0].mxu1 %v161_v54 }
 0x1f4   :  { %v566_v4 = vpop.f32.mrb[0].mxu1 }
 0x1f5   :  { %v259_v5 = vadd.f32 %v566_v4, %v445_v3  ;;  %v253_v6 = vpop.f32.mrb[1].mxu1 }
 0x1f6   :  { %v254_v7 = vadd.f32 %v445_v3, %v253_v6 }
 0x1f7   :  { %v263_v8 = vmul.f32 %v259_v5, %v259_v5 }
 0x1f8   :  { %v262_v9 = vmul.f32 %v254_v7, %v254_v7 }
 0x1f9   :  { %v265_v10 = vmul.f32 %v263_v8, %v259_v5 }
 0x1fa   :  { %v264_v11 = vmul.f32 %v262_v9, %v254_v7 }
 0x1fb   :  { %v267_v12 = vmul.f32 0.044715, %v265_v10 }
 0x1fc   :  { %v266_v13 = vmul.f32 0.044715, %v264_v11 }
 0x1fd   :  { %v269_v14 = vadd.f32 %v267_v12, %v259_v5 }
 0x1fe   :  { %v268_v15 = vadd.f32 %v266_v13, %v254_v7 }
 0x1ff   :  { %v271_v16 = vmul.f32 0.7978846, %v269_v14 }
 0x200   :  { %v270_v17 = vmul.f32 0.7978846, %v268_v15 }
 0x201   :  { %671 = vtanh.f32 %v271_v16 }
 0x202   :  { %673 = vtanh.f32 %v270_v17 }
 0x20b   :  { %v672_v18 = vpop.eup %671 }
 0x20c   :  { %v674_v19 = vpop.eup %673  ;;  %v275_v20 = vadd.f32 1.0, %v672_v18 }
 0x20d   :  { %v274_v21 = vadd.f32 1.0, %v674_v19 }
 0x20e   :  { %v277_v22 = vmul.f32 0.5, %v275_v20 }
 0x20f   :  { %v276_v23 = vmul.f32 0.5, %v274_v21 }
 0x210   :  { %v279_v25 = vmul.f32 %v277_v22, %v259_v5 }
 0x211   :  { %v278_v24 = vmul.f32 %v276_v23, %v254_v7 }
 0x213   :  { %583 = vmatprep.mubr.msk.f32.mxu0 %vm295_vm0, %v278_v24 }
 0x214   :  { %584 = vmatmul.mubr.msk.f32.vlgmr.msra.gmra.mrb[2].mxu0 %vm295_vm0, %v279_v25 }
 0x2e7   :  { %v585_v27 = vpop.f32.mrb[2].mxu0 }
 0x2e8   :  { %v368_v28 = vpop.f32.mrb[3].mxu0  ;;  %v374_v29 = vadd.f32 %v585_v27, %v446_v26 }
 0x2e9   :  { %v369_v30 = vadd.f32 %v446_v26, %v368_v28 }
 0x2ea   :  { %v378_v33 = vadd.f32 %v374_v29, %v161_v54  ;;  %v450_v54 = vld [vmem:[%s1000_s9] ss:$0 sm:$0xff] }
 0x2eb   :  { %v377_v32 = vadd.f32 %v369_v30, %v156_v53 }
 0x2ec   :  { %v382_v36 = vadd.f32 %v380_v35, %v378_v33 }
 0x2ed   :  { %v381_v34 = vadd.f32 %v379_v31, %v377_v32 }
 0x2ef   :  { %383 = vadd.xlane.f32.xlu0 %v381_v34 }
 0x2f3   :  { %385 = vadd.xlane.f32.xlu0 %v382_v36 }
 0x37c   :  { %v384_v37 = vpop.xlane.xlu0 %383 }
 0x37d   :  { %v388_v38 = vmul.f32 0.0078125, %v384_v37 }
 0x37f   :  { %v390_v39 = vsub.f32 %v381_v34, %v388_v38 }
 0x380   :  { %v386_v40 = vpop.xlane.xlu0 %385 }
 0x381   :  { %v389_v41 = vmul.f32 0.0078125, %v386_v40  ;;  %v392_v42 = vmul.f32 %v390_v39, %v390_v39 }
 0x383   :  { %v391_v43 = vsub.f32 %v382_v36, %v389_v41  ;;  %394 = vadd.xlane.f32.xlu1 %v392_v42 }
 0x385   :  { %v393_v44 = vmul.f32 %v391_v43, %v391_v43 }
 0x387   :  { %396 = vadd.xlane.f32.xlu1 %v393_v44 }
 0x410   :  { %v395_v45 = vpop.xlane.xlu1 %394 }
 0x411   :  { %v398_v46 = vmul.f32 0.0078125, %v395_v45 }
 0x413   :  { %v400_v47 = vadd.f32 1e-12, %v398_v46 }
 0x414   :  { %v397_v48 = vpop.xlane.xlu1 %396 }
 0x415   :  { %675 = vrsqrt.f32 %v400_v47  ;;  %v399_v49 = vmul.f32 0.0078125, %v397_v48 }
 0x417   :  { %v401_v50 = vadd.f32 1e-12, %v399_v49 }
 0x419   :  { %677 = vrsqrt.f32 %v401_v50 }
 0x41f   :  { %v676_v51 = vpop.eup %675 }
 0x420   :  { %v404_v53 = vmul.f32 %v676_v51, %v390_v39 }
 0x422   :  { %v413_v55 = vmul.f32 %v449_v52, %v404_v53 }
 0x423   :  { %v678_v56 = vpop.eup %677 }
 0x424   :  { %v405_v57 = vmul.f32 %v678_v56, %v391_v43  ;;  %v422_v58 = vadd.f32 %v450_v54, %v413_v55 }
 0x426   :  { %v414_v59 = vmul.f32 %v449_v52, %v405_v57  ;;  %424 = vst [vmem:[#allocation7] sm:$0xff] %v422_v58 }
 0x428   :  { %v423_v60 = vadd.f32 %v450_v54, %v414_v59 }
 0x42a   :  { %425 = vst [vmem:[#allocation7 + $0x8] sm:$0xff] %v423_v60 }
 0x42b   :  { %734 = shalt.err (!%p731_p6)
}
 0x42c   :  { %s735_s26 = scalar_lea.hbm %s1001_s10, 256 }
 0x42d   :  { %p736_p7 = scmp.ne.s32.totalorder %s1001_s10, %s735_s26  ;;  %p739_p8 = scmp.lt.u32.totalorder %s735_s26, %s1001_s10 }
 0x42f   :  { %p741_p9 = pnand %p739_p8, %p736_p7 }
 0x431   :  { %744 = shalt.err (!%p741_p9)
}
 0x432   :  { %437 = dma.vmem_to_hbm [thread:$0]  %s432_s22, 256, %s1001_s10, [#allocation4], %s752_s23, %s752_s23, %s753_s24  }
 0x433   :  { %749 = dma.done.wait [#allocation4], 256  }
 0x434   :  { %750 = vsyncadd [#allocation4], 4294967040 }
 0x435   :  { %441 = vsyncpa [#allocation3], 1 }
 0x436   :  { %442 = vsyncpa [#allocation6], 1 }
 0x437   :  { %443 = vsyncpa [#allocation4], 1 }

</bundles_post_ra>
